<compile_context>
chip_gen: v6e
topology: v6e:2x2x1
jax: 0.10.0
libtpu: 0.0.40
codegen_flags: <defaults>
</compile_context>

<pallas_src>
import functools
import sys

import jax
import jax.numpy as jnp
from jax import lax
from jax.experimental import pallas as pl
from jax.experimental.pallas import tpu as pltpu


# --------------------------------------------------------------------------- #
# hardware heuristics (host-side, no device execution)
# --------------------------------------------------------------------------- #
def _device_kind():
    try:
        return jax.devices()[0].device_kind.lower()
    except Exception:  # noqa: BLE001
        return ""


def _mxu_width():
    k = _device_kind()
    if "v5 lite" in k or "v5e" in k or "v5lite" in k:
        return 128
    return 256


def _vmem_cap_bytes():
    k = _device_kind()
    if "v5" in k or "v6" in k:
        return 100 * 1024 * 1024          # 128 MiB physical -> leave headroom
    return 56 * 1024 * 1024               # v7x-safe (64 MiB physical) default


def _heads_per_group(num_heads, head_size, mxu_width):
    hpg = max(1, mxu_width // max(1, head_size))
    hpg = min(hpg, num_heads)
    while num_heads % hpg != 0:
        hpg -= 1
    return hpg


# --------------------------------------------------------------------------- #
# capability probe: single-buffered (grid-invariant) weight operands
# (compile-only, cached, loud on fallback)
# --------------------------------------------------------------------------- #
def _probe_kernel(x_ref, o_ref):
    o_ref[...] = x_ref[...] + 1.0


@functools.lru_cache(maxsize=None)
def _single_buffer_supported():
    try:
        spec = pl.BlockSpec((8, 128), lambda i: (0, 0),
                            pipeline_mode=pl.Buffered(1))
        fn = pl.pallas_call(
            _probe_kernel,
            out_shape=jax.ShapeDtypeStruct((8, 128), jnp.float32),
            grid=(1,),
            in_specs=[spec],
            out_specs=pl.BlockSpec((8, 128), lambda i: (0, 0)),
        )
        jax.jit(fn).lower(jax.ShapeDtypeStruct((8, 128), jnp.float32)).compile()
        return True
    except Exception as e:  # noqa: BLE001
        print("WARNING: pl.Buffered(1) weight operands not supported here "
              f"({type(e).__name__}: {e}); falling back to double-buffered "
              "weights (2x weight VMEM footprint).", file=sys.stderr)
        return False


# --------------------------------------------------------------------------- #
# helpers
# --------------------------------------------------------------------------- #
def _layer_norm(x, gain, bias, eps):
    """Module-exact LayerNorm: UNBIASED variance (torch.var(unbiased=True))."""
    e = x.shape[-1]
    mean = jnp.mean(x, axis=-1, keepdims=True)
    d = x - mean
    var = jnp.sum(d * d, axis=-1, keepdims=True) * (1.0 / (e - 1))
    return d * lax.rsqrt(var + eps) * gain + bias


def _matmul_nt(a, b):
    """a[M, D] @ b[N, D]^T -> [M, N]; bf16 operands, f32 accumulation."""
    return lax.dot_general(a, b, (((1,), (1,)), ((), ())),
                           preferred_element_type=jnp.float32)


# --------------------------------------------------------------------------- #
# embedding kernel: scalar-prefetch DMA row gather + position embedding
# --------------------------------------------------------------------------- #
def _embedding_kernel(ids_ref, pos_ref, tok_hbm_ref, out_ref, tok_buf, sems,
                      *, nsem):
    b = pl.program_id(0)
    L = out_ref.shape[1]

    # windowed gather: up to `nsem` row DMAs in flight
    @pl.loop(0, L)
    def _(i):
        slot = i % nsem

        @pl.when(i >= nsem)
        def _wait_prev():
            pltpu.make_async_copy(tok_hbm_ref.at[0], tok_buf.at[i - nsem],
                                  sems.at[slot]).wait()

        tok_id = ids_ref[b, i]
        pltpu.make_async_copy(tok_hbm_ref.at[tok_id], tok_buf.at[i],
                              sems.at[slot]).start()

    # drain the tail of the window (static bounds: L is a trace-time constant)
    for j in range(max(0, L - nsem), L):
        pltpu.make_async_copy(tok_hbm_ref.at[0], tok_buf.at[j],
                              sems.at[j % nsem]).wait()

    out_ref[0] = tok_buf[...] + pos_ref[...]


def bert_embedding_pallas(input_ids, token_table, pos_table):
    B, L = input_ids.shape
    V, E = token_table.shape
    nsem = min(8, L)
    kernel = functools.partial(_embedding_kernel, nsem=nsem)
    return pl.pallas_call(
        kernel,
        out_shape=jax.ShapeDtypeStruct((B, L, E), jnp.float32),
        grid_spec=pltpu.PrefetchScalarGridSpec(
            num_scalar_prefetch=1,
            grid=(B,),
            in_specs=[pl.BlockSpec((L, E), lambda b, ids: (0, 0)),      # pos emb
                      pl.BlockSpec(memory_space=pl.ANY)],               # token tbl (HBM)
            out_specs=pl.BlockSpec((1, L, E), lambda b, ids: (b, 0, 0)),
            scratch_shapes=[pltpu.VMEM((L, E), jnp.float32),
                            pltpu.SemaphoreType.DMA((nsem,))]),
        compiler_params=pltpu.CompilerParams(dimension_semantics=("parallel",)),
    )(input_ids.astype(jnp.int32), pos_table, token_table)


# --------------------------------------------------------------------------- #
# fused transformer layer kernel (attention + LN1 + FFN + LN2)
# --------------------------------------------------------------------------- #
def _transformer_layer_kernel(
    x_tile_ref,          # [1, TL, E] f32  query/residual rows
    x_full_ref,          # [1, L,  E] f32  full sequence (K/V, read at t==0)
    wq_ref, wk_ref, wv_ref,   # [G, E, ghs] bf16 (scale pre-folded into wq)
    wo_ref,                   # [G, ghs, E] bf16
    bo_ref,                   # [1, E] f32
    w1_ref, b1_ref,           # [E, 4E] bf16, [1, 4E] f32
    w2_ref, b2_ref,           # [4E, E] bf16, [1, E] f32
    g1_ref, be1_ref,          # [1, E] f32
    g2_ref, be2_ref,          # [1, E] f32
    out_ref,                  # [1, TL, E]
    k_scr, v_scr,             # VMEM [G, L, ghs] bf16 (persist across query tiles)
    *, num_groups, heads_per_group, head_size, eps,
):
    TL = x_tile_ref.shape[1]
    E = x_tile_ref.shape[2]
    G = num_groups
    hpg = heads_per_group
    hs = head_size

    # ---- K/V projections once per batch row, reused for every query tile -----
    @pl.when(pl.program_id(1) == 0)
    def _():
        xf_b = x_full_ref[0].astype(jnp.bfloat16)                      # [L, E]
        for g in range(G):                                             # static, small
            k_scr[g] = jnp.dot(xf_b, wk_ref[g],
                               preferred_element_type=jnp.float32).astype(jnp.bfloat16)
            v_scr[g] = jnp.dot(xf_b, wv_ref[g],
                               preferred_element_type=jnp.float32).astype(jnp.bfloat16)

    xq = x_tile_ref[0]                                                 # [TL, E] f32
    xq_b = xq.astype(jnp.bfloat16)

    # ---- multi-head attention, head-grouped for MXU fill ----------------------
    def group_body(g, acc):
        q_g = jnp.dot(xq_b, wq_ref[g],
                      preferred_element_type=jnp.float32).astype(jnp.bfloat16)  # [TL, ghs]
        k_g = k_scr[g]                                                 # [L, ghs] bf16
        v_g = v_scr[g]
        o_parts = []
        for h in range(hpg):                                           # static inner unroll
            sl = slice(h * hs, (h + 1) * hs)
            s = _matmul_nt(q_g[:, sl], k_g[:, sl])                     # [TL, L] f32
            s = s - jnp.max(s, axis=-1, keepdims=True)
            p = jnp.exp(s)
            p = p * pl.reciprocal(jnp.sum(p, axis=-1, keepdims=True), approx=True)
            o_parts.append(jnp.dot(p.astype(jnp.bfloat16), v_g[:, sl],
                                   preferred_element_type=jnp.float32))  # [TL, hs]
        o_g = (jnp.concatenate(o_parts, axis=-1) if hpg > 1 else o_parts[0])
        o_g = o_g.astype(jnp.bfloat16)                                 # [TL, ghs]
        # concat(o_h) @ Wo == sum_g o_g @ Wo_rows_g  (full-K matmul per group)
        return acc + jnp.dot(o_g, wo_ref[g], preferred_element_type=jnp.float32)

    attn0 = jnp.zeros((TL, E), jnp.float32)
    if G == 1:
        attn = group_body(0, attn0)
    else:
        attn = lax.fori_loop(0, G, group_body, attn0, unroll=min(2, G))
    attn = attn + bo_ref[0]

    # residual + LayerNorm 1 (f32)
    h1 = _layer_norm(xq + attn, g1_ref[0], be1_ref[0], eps)

    # ---- feed-forward: Linear -> exact GELU -> Linear --------------------------
    ff = jnp.dot(h1.astype(jnp.bfloat16), w1_ref[...],
                 preferred_element_type=jnp.float32) + b1_ref[0]
    ff = jax.nn.gelu(ff, approximate=False)          # erf-based, matches nn.GELU()
    ff = jnp.dot(ff.astype(jnp.bfloat16), w2_ref[...],
                 preferred_element_type=jnp.float32) + b2_ref[0]

    # residual + LayerNorm 2 (f32)
    out = _layer_norm(h1 + ff, g2_ref[0], be2_ref[0], eps)
    out_ref[0] = out.astype(out_ref.dtype)


def transformer_layer_pallas(x, kp, *, num_heads, eps=1e-5, seq_tile=256,
                             single_buffer_weights=None):
    """x: [B, L, E] f32.  kp: dict of kernel-layout params (head-grouped bf16)."""
    B, L, E = x.shape
    hs = E // num_heads
    G, _, ghs = kp["wq_g"].shape
    hpg = ghs // hs
    assert G * hpg == num_heads

    TL = L if not seq_tile else min(seq_tile, L)
    if L % TL != 0:
        TL = L
    n_qt = L // TL

    if single_buffer_weights is None:
        single_buffer_weights = _single_buffer_supported()

    ordered = [kp["wq_g"], kp["wk_g"], kp["wv_g"], kp["wo_g"], kp["bo"],
               kp["w1"], kp["b1"], kp["w2"], kp["b2"],
               kp["g1"], kp["be1"], kp["g2"], kp["be2"]]

    def const_spec(a):
        nd = a.ndim
        imap = lambda b, t, _nd=nd: (0,) * _nd
        if single_buffer_weights:
            # grid-invariant -> single buffer, halves the weight VMEM footprint
            return pl.BlockSpec(a.shape, imap, pipeline_mode=pl.Buffered(1))
        return pl.BlockSpec(a.shape, imap)

    # ---- VMEM budget from the actually-resident block/scratch bytes -----------
    weight_bytes = sum(a.size * a.dtype.itemsize for a in ordered)
    wbuf = 1 if single_buffer_weights else 2
    act_bytes = 2 * (TL * E * 4) + 2 * (L * E * 4) + 2 * (TL * E * 4)   # in tile + full view + out tile (dbl-buffered)
    scr_bytes = 2 * (G * L * ghs * 2)                                   # bf16 K/V scratch
    inter_bytes = 2 * (TL * L * 4) + 2 * (TL * 4 * E * 4)               # live scores + FFN intermediates
    vmem_limit = int(min(_vmem_cap_bytes(),
                         max(32 << 20,
                             wbuf * weight_bytes + act_bytes + scr_bytes
                             + inter_bytes + (8 << 20))))

    kernel = functools.partial(_transformer_layer_kernel,
                               num_groups=G, heads_per_group=hpg,
                               head_size=hs, eps=eps)

    return pl.pallas_call(
        kernel,
        out_shape=jax.ShapeDtypeStruct((B, L, E), x.dtype),
        grid_spec=pltpu.PrefetchScalarGridSpec(
            num_scalar_prefetch=0,
            grid=(B, n_qt),
            in_specs=[pl.BlockSpec((1, TL, E), lambda b, t: (b, t, 0)),   # query tile
                      pl.BlockSpec((1, L, E), lambda b, t: (b, 0, 0))]    # full seq (K/V)
                     + [const_spec(a) for a in ordered],
            out_specs=pl.BlockSpec((1, TL, E), lambda b, t: (b, t, 0)),
            scratch_shapes=[pltpu.VMEM((G, L, ghs), jnp.bfloat16),
                            pltpu.VMEM((G, L, ghs), jnp.bfloat16)]),
        compiler_params=pltpu.CompilerParams(
            dimension_semantics=("parallel", "arbitrary"),
            vmem_limit_bytes=vmem_limit),
    )(x, x, *ordered)


# --------------------------------------------------------------------------- #
# classifier kernel (lane-padded output columns, L-tiled grid)
# --------------------------------------------------------------------------- #
def _classifier_kernel(x_ref, wc_ref, bc_ref, out_ref):
    logits = jnp.dot(x_ref[0], wc_ref[...],
                     preferred_element_type=jnp.float32) + bc_ref[0]
    out_ref[0] = logits.astype(out_ref.dtype)


def bert_classifier_pallas(x, wc_pad, bc_pad, num_classes):
    B, L, E = x.shape
    Cp = wc_pad.shape[1]
    TLc = 256 if (L % 256 == 0) else L
    n_lt = L // TLc
    out = pl.pallas_call(
        _classifier_kernel,
        out_shape=jax.ShapeDtypeStruct((B, L, Cp), jnp.float32),
        grid=(B, n_lt),
        in_specs=[pl.BlockSpec((1, TLc, E), lambda b, t: (b, t, 0)),
                  pl.BlockSpec((E, Cp), lambda b, t: (0, 0)),
                  pl.BlockSpec((1, Cp), lambda b, t: (0, 0))],
        out_specs=pl.BlockSpec((1, TLc, Cp), lambda b, t: (b, t, 0)),
        compiler_params=pltpu.CompilerParams(
            dimension_semantics=("parallel", "parallel")),
    )(x, wc_pad, bc_pad)
    return out[:, :, :num_classes]


# --------------------------------------------------------------------------- #
# full BERT forward (Pallas)
# --------------------------------------------------------------------------- #
def bert_forward(input_ids, kparams, *, num_heads, eps=1e-5, seq_tile=256):
    h = bert_embedding_pallas(input_ids, kparams["token_emb"], kparams["pos_emb"])
    for lp in kparams["layers"]:
        h = transformer_layer_pallas(h, lp, num_heads=num_heads, eps=eps,
                                     seq_tile=seq_tile)
    return bert_classifier_pallas(h, kparams["wc"], kparams["bc"],
                                  kparams["num_classes"])


def to_kernel_params(params, *, num_heads, mxu_width=None):
    """One-time host-side prep: head-group the attention weights, pre-fold
    1/sqrt(head_size) into Wq, cast matmul weights to bf16, pad the classifier
    columns to a lane-dense multiple of 128."""
    if mxu_width is None:
        mxu_width = _mxu_width()
    bf16 = lambda a: a.astype(jnp.bfloat16)

    layers = []
    for lp in params["layers"]:
        H, E, hs = lp["wq_h"].shape
        assert H == num_heads
        hpg = _heads_per_group(num_heads, hs, mxu_width)
        G = num_heads // hpg
        scale = 1.0 / (hs ** 0.5)

        def group_in(w, _G=G, _hpg=hpg, _E=E, _hs=hs):     # [H,E,hs] -> [G,E,hpg*hs]
            return (w.reshape(_G, _hpg, _E, _hs)
                     .transpose(0, 2, 1, 3)
                     .reshape(_G, _E, _hpg * _hs))

        def group_out(w, _G=G, _hpg=hpg, _E=E, _hs=hs):    # [H,hs,E] -> [G,hpg*hs,E]
            return w.reshape(_G, _hpg * _hs, _E)

        layers.append(dict(
            wq_g=bf16(group_in(lp["wq_h"] * scale)),
            wk_g=bf16(group_in(lp["wk_h"])),
            wv_g=bf16(group_in(lp["wv_h"])),
            wo_g=bf16(group_out(lp["wo_h"])),
            bo=lp["bo"],
            w1=bf16(lp["w1"]), b1=lp["b1"], w2=bf16(lp["w2"]), b2=lp["b2"],
            g1=lp["g1"], be1=lp["be1"], g2=lp["g2"], be2=lp["be2"]))

    C = params["wc"].shape[1]
    Cp = ((C + 127) // 128) * 128
    wc_pad = jnp.zeros((params["wc"].shape[0], Cp), params["wc"].dtype
                       ).at[:, :C].set(params["wc"])
    bc_pad = jnp.zeros((1, Cp), params["bc"].dtype).at[:, :C].set(params["bc"])

    return dict(token_emb=params["token_emb"], pos_emb=params["pos_emb"],
                layers=layers, wc=wc_pad, bc=bc_pad, num_classes=C)


# --------------------------------------------------------------------------- #
# pure-JAX f32 reference (mirrors the PyTorch module)
# --------------------------------------------------------------------------- #
def _transformer_layer_ref(x, p, *, num_heads, eps=1e-5):
    B, L, E = x.shape
    hs = E // num_heads

    attn = jnp.zeros_like(x)
    for h in range(num_heads):
        q = x @ p["wq_h"][h]
        k = x @ p["wk_h"][h]
        v = x @ p["wv_h"][h]
        s = jnp.einsum("bld,bmd->blm", q, k) / (hs ** 0.5)
        a = jax.nn.softmax(s, axis=-1)
        o = jnp.einsum("blm,bmd->bld", a, v)
        attn = attn + o @ p["wo_h"][h]
    attn = attn + p["bo"][0]

    def ln(t, g, b):
        m = t.mean(-1, keepdims=True)
        d = t - m
        var = jnp.sum(d * d, -1, keepdims=True) / (E - 1)   # unbiased, as in module
        return d / jnp.sqrt(var + eps) * g[0] + b[0]

    h1 = ln(x + attn, p["g1"], p["be1"])
    ff = jax.nn.gelu(h1 @ p["w1"] + p["b1"][0], approximate=False)
    ff = ff @ p["w2"] + p["b2"][0]
    return ln(h1 + ff, p["g2"], p["be2"])


def bert_ref(input_ids, params, *, num_heads, eps=1e-5):
    h = params["token_emb"][input_ids] + params["pos_emb"][None, :, :]
    for lp in params["layers"]:
        h = _transformer_layer_ref(h, lp, num_heads=num_heads, eps=eps)
    return h @ params["wc"] + params["bc"][0]


# --------------------------------------------------------------------------- #
if __name__ == "__main__":
    jax.config.update("jax_default_matmul_precision", "highest")

    B, L, E, H, NLAYERS, V, C = 2, 16, 32, 4, 2, 27, 3
    hs = E // H

    key = jax.random.PRNGKey(0)
    keys = iter(jax.random.split(key, 64))

    def rnd(shape, scale=0.05):
        return scale * jax.random.normal(next(keys), shape, dtype=jnp.float32)

    layers = []
    for _ in range(NLAYERS):
        layers.append(dict(
            wq_h=rnd((H, E, hs)), wk_h=rnd((H, E, hs)), wv_h=rnd((H, E, hs)),
            wo_h=rnd((H, hs, E)), bo=rnd((1, E)),
            w1=rnd((E, 4 * E)), b1=rnd((1, 4 * E)),
            w2=rnd((4 * E, E)), b2=rnd((1, E)),
            g1=1.0 + rnd((1, E), 0.1), be1=rnd((1, E), 0.1),
            g2=1.0 + rnd((1, E), 0.1), be2=rnd((1, E), 0.1)))
    params = dict(
        token_emb=rnd((V, E), 0.1),
        pos_emb=rnd((L, E), 0.1),
        layers=layers,
        wc=rnd((E, C)), bc=rnd((1, C)))

    input_ids = jax.random.randint(next(keys), (B, L), 0, V)

    kparams = to_kernel_params(params, num_heads=H)

    out = bert_forward(input_ids, kparams, num_heads=H, seq_tile=256)
    out = jax.block_until_ready(out)

    ref = bert_ref(input_ids, params, num_heads=H)
    assert out.shape == (B, L, C)
    # kernel uses bf16 matmul operands + approx reciprocal -> loose tolerance vs f32 ref
    err = jnp.max(jnp.abs(out - ref))
    assert jnp.allclose(out, ref, atol=5e-2, rtol=5e-2), (
        f"mismatch vs JAX reference, max abs err = {err}")

    print("KERNEL_OK")
</pallas_src>

<mosaic_0001>
module attributes {stable_mosaic.version = 11 : i64} {
  func.func @_embedding_kernel(%arg0: i32, %arg1: memref<2x16xi32, #tpu.memory_space<smem>>, %arg2: memref<16x32xf32, #tpu.memory_space<vmem>>, %arg3: memref<27x32xf32, #tpu.memory_space<any>>, %arg4: memref<1x16x32xf32, #tpu.memory_space<vmem>>, %arg5: memref<16x32xf32, #tpu.memory_space<vmem>>, %arg6: memref<8x!tpu.dma_semaphore, #tpu.memory_space<semaphore_mem>>) attributes {dimension_semantics = [#tpu.dimension_semantics<parallel>], iteration_bounds = array<i64: 2>, scalar_prefetch = 1 : i64, scratch_operands = 2 : i64, tpu.core_type = #tpu.core_type<tc>, window_params = [{pipeline_mode = #tpu.pipeline_mode<synchronous>, transform_indices = @transform_0, window_bounds = array<i64: 16, 32>}, {}, {transform_indices = @transform_2, window_bounds = array<i64: 1, 16, 32>}]} {
    %c0_i32 = arith.constant 0 : i32
    %c16_i32 = arith.constant 16 : i32
    %0 = arith.addi %c0_i32, %c16_i32 : i32
    %c1_i32 = arith.constant 1 : i32
    scf.for %arg7 = %c0_i32 to %0 step %c1_i32  : i32 {
      %c1_i32_33 = arith.constant 1 : i32
      %55 = arith.muli %arg7, %c1_i32_33 : i32
      %c0_i32_34 = arith.constant 0 : i32
      %56 = arith.addi %c0_i32_34, %55 : i32
      %c8_i32_35 = arith.constant 8 : i32
      %c0_i32_36 = arith.constant 0 : i32
      %57 = arith.cmpi eq, %c8_i32_35, %c0_i32_36 : i32
      %c1_i32_37 = arith.constant 1 : i32
      %58 = arith.select %57, %c1_i32_37, %c8_i32_35 : i32
      %59 = arith.remsi %56, %58 : i32
      %c0_i32_38 = arith.constant 0 : i32
      %60 = arith.cmpi ne, %59, %c0_i32_38 : i32
      %c0_i32_39 = arith.constant 0 : i32
      %61 = arith.cmpi slt, %59, %c0_i32_39 : i32
      %c0_i32_40 = arith.constant 0 : i32
      %62 = arith.cmpi slt, %58, %c0_i32_40 : i32
      %63 = arith.xori %61, %62 : i1
      %64 = arith.andi %63, %60 : i1
      %65 = arith.addi %59, %58 : i32
      %66 = arith.select %64, %65, %59 : i32
      %c8_i32_41 = arith.constant 8 : i32
      %67 = arith.cmpi sge, %56, %c8_i32_41 : i32
      %68 = arith.extui %67 : i1 to i32
      %c0_i32_42 = arith.constant 0 : i32
      %69 = arith.cmpi ne, %68, %c0_i32_42 : i32
      scf.if %69 {
        %c8_i32_45 = arith.constant 8 : i32
        %79 = arith.subi %56, %c8_i32_45 : i32
        %c0_i32_46 = arith.constant 0 : i32
        %c0_i32_47 = arith.constant 0 : i32
        %80 = tpu.memref_slice %arg3[%c0_i32_46, %c0_i32_47] : memref<27x32xf32, #tpu.memory_space<any>> -> memref<1x32xf32, #tpu.memory_space<any>>
        %81 = tpu.memref_squeeze %80 : memref<1x32xf32, #tpu.memory_space<any>> -> memref<32xf32, #tpu.memory_space<any>>
        %c0_i32_48 = arith.constant 0 : i32
        %82 = tpu.memref_slice %arg5[%79, %c0_i32_48] : memref<16x32xf32, #tpu.memory_space<vmem>> -> memref<1x32xf32, #tpu.memory_space<vmem>>
        %83 = tpu.memref_squeeze %82 : memref<1x32xf32, #tpu.memory_space<vmem>> -> memref<32xf32, #tpu.memory_space<vmem>>
        %84 = tpu.memref_slice %arg6[%66] : memref<8x!tpu.dma_semaphore, #tpu.memory_space<semaphore_mem>> -> memref<1x!tpu.dma_semaphore, #tpu.memory_space<semaphore_mem>>
        %85 = tpu.memref_squeeze %84 : memref<1x!tpu.dma_semaphore, #tpu.memory_space<semaphore_mem>> -> memref<!tpu.dma_semaphore, #tpu.memory_space<semaphore_mem>>
        tpu.wait_dma2 semaphore(%85 : memref<!tpu.dma_semaphore, #tpu.memory_space<semaphore_mem>>) src(%81 : memref<32xf32, #tpu.memory_space<any>>) dst(%83 : memref<32xf32, #tpu.memory_space<vmem>>)
      } else {
      }
      %70 = arith.index_cast %arg0 : i32 to index
      %71 = arith.index_cast %56 : i32 to index
      %72 = memref.load %arg1[%70, %71] : memref<2x16xi32, #tpu.memory_space<smem>>
      %c0_i32_43 = arith.constant 0 : i32
      %73 = tpu.memref_slice %arg3[%72, %c0_i32_43] : memref<27x32xf32, #tpu.memory_space<any>> -> memref<1x32xf32, #tpu.memory_space<any>>
      %74 = tpu.memref_squeeze %73 : memref<1x32xf32, #tpu.memory_space<any>> -> memref<32xf32, #tpu.memory_space<any>>
      %c0_i32_44 = arith.constant 0 : i32
      %75 = tpu.memref_slice %arg5[%56, %c0_i32_44] : memref<16x32xf32, #tpu.memory_space<vmem>> -> memref<1x32xf32, #tpu.memory_space<vmem>>
      %76 = tpu.memref_squeeze %75 : memref<1x32xf32, #tpu.memory_space<vmem>> -> memref<32xf32, #tpu.memory_space<vmem>>
      %77 = tpu.memref_slice %arg6[%66] : memref<8x!tpu.dma_semaphore, #tpu.memory_space<semaphore_mem>> -> memref<1x!tpu.dma_semaphore, #tpu.memory_space<semaphore_mem>>
      %78 = tpu.memref_squeeze %77 : memref<1x!tpu.dma_semaphore, #tpu.memory_space<semaphore_mem>> -> memref<!tpu.dma_semaphore, #tpu.memory_space<semaphore_mem>>
      tpu.enqueue_dma source(%74 : memref<32xf32, #tpu.memory_space<any>>) target(%76 : memref<32xf32, #tpu.memory_space<vmem>>) target_semaphore(%78 : memref<!tpu.dma_semaphore, #tpu.memory_space<semaphore_mem>>)
    }
    %c16_i32_0 = arith.constant 16 : i32
    %c0_i32_1 = arith.constant 0 : i32
    %c8_i32 = arith.constant 8 : i32
    %c0_i32_2 = arith.constant 0 : i32
    %c0_i32_3 = arith.constant 0 : i32
    %1 = tpu.memref_slice %arg3[%c0_i32_1, %c0_i32_3] : memref<27x32xf32, #tpu.memory_space<any>> -> memref<1x32xf32, #tpu.memory_space<any>>
    %2 = tpu.memref_squeeze %1 : memref<1x32xf32, #tpu.memory_space<any>> -> memref<32xf32, #tpu.memory_space<any>>
    %c0_i32_4 = arith.constant 0 : i32
    %3 = tpu.memref_slice %arg5[%c8_i32, %c0_i32_4] : memref<16x32xf32, #tpu.memory_space<vmem>> -> memref<1x32xf32, #tpu.memory_space<vmem>>
    %4 = tpu.memref_squeeze %3 : memref<1x32xf32, #tpu.memory_space<vmem>> -> memref<32xf32, #tpu.memory_space<vmem>>
    %5 = tpu.memref_slice %arg6[%c0_i32_2] : memref<8x!tpu.dma_semaphore, #tpu.memory_space<semaphore_mem>> -> memref<1x!tpu.dma_semaphore, #tpu.memory_space<semaphore_mem>>
    %6 = tpu.memref_squeeze %5 : memref<1x!tpu.dma_semaphore, #tpu.memory_space<semaphore_mem>> -> memref<!tpu.dma_semaphore, #tpu.memory_space<semaphore_mem>>
    tpu.wait_dma2 semaphore(%6 : memref<!tpu.dma_semaphore, #tpu.memory_space<semaphore_mem>>) src(%2 : memref<32xf32, #tpu.memory_space<any>>) dst(%4 : memref<32xf32, #tpu.memory_space<vmem>>)
    %c0_i32_5 = arith.constant 0 : i32
    %c9_i32 = arith.constant 9 : i32
    %c1_i32_6 = arith.constant 1 : i32
    %c0_i32_7 = arith.constant 0 : i32
    %7 = tpu.memref_slice %arg3[%c0_i32_5, %c0_i32_7] : memref<27x32xf32, #tpu.memory_space<any>> -> memref<1x32xf32, #tpu.memory_space<any>>
    %8 = tpu.memref_squeeze %7 : memref<1x32xf32, #tpu.memory_space<any>> -> memref<32xf32, #tpu.memory_space<any>>
    %c0_i32_8 = arith.constant 0 : i32
    %9 = tpu.memref_slice %arg5[%c9_i32, %c0_i32_8] : memref<16x32xf32, #tpu.memory_space<vmem>> -> memref<1x32xf32, #tpu.memory_space<vmem>>
    %10 = tpu.memref_squeeze %9 : memref<1x32xf32, #tpu.memory_space<vmem>> -> memref<32xf32, #tpu.memory_space<vmem>>
    %11 = tpu.memref_slice %arg6[%c1_i32_6] : memref<8x!tpu.dma_semaphore, #tpu.memory_space<semaphore_mem>> -> memref<1x!tpu.dma_semaphore, #tpu.memory_space<semaphore_mem>>
    %12 = tpu.memref_squeeze %11 : memref<1x!tpu.dma_semaphore, #tpu.memory_space<semaphore_mem>> -> memref<!tpu.dma_semaphore, #tpu.memory_space<semaphore_mem>>
    tpu.wait_dma2 semaphore(%12 : memref<!tpu.dma_semaphore, #tpu.memory_space<semaphore_mem>>) src(%8 : memref<32xf32, #tpu.memory_space<any>>) dst(%10 : memref<32xf32, #tpu.memory_space<vmem>>)
    %c0_i32_9 = arith.constant 0 : i32
    %c10_i32 = arith.constant 10 : i32
    %c2_i32 = arith.constant 2 : i32
    %c0_i32_10 = arith.constant 0 : i32
    %13 = tpu.memref_slice %arg3[%c0_i32_9, %c0_i32_10] : memref<27x32xf32, #tpu.memory_space<any>> -> memref<1x32xf32, #tpu.memory_space<any>>
    %14 = tpu.memref_squeeze %13 : memref<1x32xf32, #tpu.memory_space<any>> -> memref<32xf32, #tpu.memory_space<any>>
    %c0_i32_11 = arith.constant 0 : i32
    %15 = tpu.memref_slice %arg5[%c10_i32, %c0_i32_11] : memref<16x32xf32, #tpu.memory_space<vmem>> -> memref<1x32xf32, #tpu.memory_space<vmem>>
    %16 = tpu.memref_squeeze %15 : memref<1x32xf32, #tpu.memory_space<vmem>> -> memref<32xf32, #tpu.memory_space<vmem>>
    %17 = tpu.memref_slice %arg6[%c2_i32] : memref<8x!tpu.dma_semaphore, #tpu.memory_space<semaphore_mem>> -> memref<1x!tpu.dma_semaphore, #tpu.memory_space<semaphore_mem>>
    %18 = tpu.memref_squeeze %17 : memref<1x!tpu.dma_semaphore, #tpu.memory_space<semaphore_mem>> -> memref<!tpu.dma_semaphore, #tpu.memory_space<semaphore_mem>>
    tpu.wait_dma2 semaphore(%18 : memref<!tpu.dma_semaphore, #tpu.memory_space<semaphore_mem>>) src(%14 : memref<32xf32, #tpu.memory_space<any>>) dst(%16 : memref<32xf32, #tpu.memory_space<vmem>>)
    %c0_i32_12 = arith.constant 0 : i32
    %c11_i32 = arith.constant 11 : i32
    %c3_i32 = arith.constant 3 : i32
    %c0_i32_13 = arith.constant 0 : i32
    %19 = tpu.memref_slice %arg3[%c0_i32_12, %c0_i32_13] : memref<27x32xf32, #tpu.memory_space<any>> -> memref<1x32xf32, #tpu.memory_space<any>>
    %20 = tpu.memref_squeeze %19 : memref<1x32xf32, #tpu.memory_space<any>> -> memref<32xf32, #tpu.memory_space<any>>
    %c0_i32_14 = arith.constant 0 : i32
    %21 = tpu.memref_slice %arg5[%c11_i32, %c0_i32_14] : memref<16x32xf32, #tpu.memory_space<vmem>> -> memref<1x32xf32, #tpu.memory_space<vmem>>
    %22 = tpu.memref_squeeze %21 : memref<1x32xf32, #tpu.memory_space<vmem>> -> memref<32xf32, #tpu.memory_space<vmem>>
    %23 = tpu.memref_slice %arg6[%c3_i32] : memref<8x!tpu.dma_semaphore, #tpu.memory_space<semaphore_mem>> -> memref<1x!tpu.dma_semaphore, #tpu.memory_space<semaphore_mem>>
    %24 = tpu.memref_squeeze %23 : memref<1x!tpu.dma_semaphore, #tpu.memory_space<semaphore_mem>> -> memref<!tpu.dma_semaphore, #tpu.memory_space<semaphore_mem>>
    tpu.wait_dma2 semaphore(%24 : memref<!tpu.dma_semaphore, #tpu.memory_space<semaphore_mem>>) src(%20 : memref<32xf32, #tpu.memory_space<any>>) dst(%22 : memref<32xf32, #tpu.memory_space<vmem>>)
    %c0_i32_15 = arith.constant 0 : i32
    %c12_i32 = arith.constant 12 : i32
    %c4_i32 = arith.constant 4 : i32
    %c0_i32_16 = arith.constant 0 : i32
    %25 = tpu.memref_slice %arg3[%c0_i32_15, %c0_i32_16] : memref<27x32xf32, #tpu.memory_space<any>> -> memref<1x32xf32, #tpu.memory_space<any>>
    %26 = tpu.memref_squeeze %25 : memref<1x32xf32, #tpu.memory_space<any>> -> memref<32xf32, #tpu.memory_space<any>>
    %c0_i32_17 = arith.constant 0 : i32
    %27 = tpu.memref_slice %arg5[%c12_i32, %c0_i32_17] : memref<16x32xf32, #tpu.memory_space<vmem>> -> memref<1x32xf32, #tpu.memory_space<vmem>>
    %28 = tpu.memref_squeeze %27 : memref<1x32xf32, #tpu.memory_space<vmem>> -> memref<32xf32, #tpu.memory_space<vmem>>
    %29 = tpu.memref_slice %arg6[%c4_i32] : memref<8x!tpu.dma_semaphore, #tpu.memory_space<semaphore_mem>> -> memref<1x!tpu.dma_semaphore, #tpu.memory_space<semaphore_mem>>
    %30 = tpu.memref_squeeze %29 : memref<1x!tpu.dma_semaphore, #tpu.memory_space<semaphore_mem>> -> memref<!tpu.dma_semaphore, #tpu.memory_space<semaphore_mem>>
    tpu.wait_dma2 semaphore(%30 : memref<!tpu.dma_semaphore, #tpu.memory_space<semaphore_mem>>) src(%26 : memref<32xf32, #tpu.memory_space<any>>) dst(%28 : memref<32xf32, #tpu.memory_space<vmem>>)
    %c0_i32_18 = arith.constant 0 : i32
    %c13_i32 = arith.constant 13 : i32
    %c5_i32 = arith.constant 5 : i32
    %c0_i32_19 = arith.constant 0 : i32
    %31 = tpu.memref_slice %arg3[%c0_i32_18, %c0_i32_19] : memref<27x32xf32, #tpu.memory_space<any>> -> memref<1x32xf32, #tpu.memory_space<any>>
    %32 = tpu.memref_squeeze %31 : memref<1x32xf32, #tpu.memory_space<any>> -> memref<32xf32, #tpu.memory_space<any>>
    %c0_i32_20 = arith.constant 0 : i32
    %33 = tpu.memref_slice %arg5[%c13_i32, %c0_i32_20] : memref<16x32xf32, #tpu.memory_space<vmem>> -> memref<1x32xf32, #tpu.memory_space<vmem>>
    %34 = tpu.memref_squeeze %33 : memref<1x32xf32, #tpu.memory_space<vmem>> -> memref<32xf32, #tpu.memory_space<vmem>>
    %35 = tpu.memref_slice %arg6[%c5_i32] : memref<8x!tpu.dma_semaphore, #tpu.memory_space<semaphore_mem>> -> memref<1x!tpu.dma_semaphore, #tpu.memory_space<semaphore_mem>>
    %36 = tpu.memref_squeeze %35 : memref<1x!tpu.dma_semaphore, #tpu.memory_space<semaphore_mem>> -> memref<!tpu.dma_semaphore, #tpu.memory_space<semaphore_mem>>
    tpu.wait_dma2 semaphore(%36 : memref<!tpu.dma_semaphore, #tpu.memory_space<semaphore_mem>>) src(%32 : memref<32xf32, #tpu.memory_space<any>>) dst(%34 : memref<32xf32, #tpu.memory_space<vmem>>)
    %c0_i32_21 = arith.constant 0 : i32
    %c14_i32 = arith.constant 14 : i32
    %c6_i32 = arith.constant 6 : i32
    %c0_i32_22 = arith.constant 0 : i32
    %37 = tpu.memref_slice %arg3[%c0_i32_21, %c0_i32_22] : memref<27x32xf32, #tpu.memory_space<any>> -> memref<1x32xf32, #tpu.memory_space<any>>
    %38 = tpu.memref_squeeze %37 : memref<1x32xf32, #tpu.memory_space<any>> -> memref<32xf32, #tpu.memory_space<any>>
    %c0_i32_23 = arith.constant 0 : i32
    %39 = tpu.memref_slice %arg5[%c14_i32, %c0_i32_23] : memref<16x32xf32, #tpu.memory_space<vmem>> -> memref<1x32xf32, #tpu.memory_space<vmem>>
    %40 = tpu.memref_squeeze %39 : memref<1x32xf32, #tpu.memory_space<vmem>> -> memref<32xf32, #tpu.memory_space<vmem>>
    %41 = tpu.memref_slice %arg6[%c6_i32] : memref<8x!tpu.dma_semaphore, #tpu.memory_space<semaphore_mem>> -> memref<1x!tpu.dma_semaphore, #tpu.memory_space<semaphore_mem>>
    %42 = tpu.memref_squeeze %41 : memref<1x!tpu.dma_semaphore, #tpu.memory_space<semaphore_mem>> -> memref<!tpu.dma_semaphore, #tpu.memory_space<semaphore_mem>>
    tpu.wait_dma2 semaphore(%42 : memref<!tpu.dma_semaphore, #tpu.memory_space<semaphore_mem>>) src(%38 : memref<32xf32, #tpu.memory_space<any>>) dst(%40 : memref<32xf32, #tpu.memory_space<vmem>>)
    %c0_i32_24 = arith.constant 0 : i32
    %c15_i32 = arith.constant 15 : i32
    %c7_i32 = arith.constant 7 : i32
    %c0_i32_25 = arith.constant 0 : i32
    %43 = tpu.memref_slice %arg3[%c0_i32_24, %c0_i32_25] : memref<27x32xf32, #tpu.memory_space<any>> -> memref<1x32xf32, #tpu.memory_space<any>>
    %44 = tpu.memref_squeeze %43 : memref<1x32xf32, #tpu.memory_space<any>> -> memref<32xf32, #tpu.memory_space<any>>
    %c0_i32_26 = arith.constant 0 : i32
    %45 = tpu.memref_slice %arg5[%c15_i32, %c0_i32_26] : memref<16x32xf32, #tpu.memory_space<vmem>> -> memref<1x32xf32, #tpu.memory_space<vmem>>
    %46 = tpu.memref_squeeze %45 : memref<1x32xf32, #tpu.memory_space<vmem>> -> memref<32xf32, #tpu.memory_space<vmem>>
    %47 = tpu.memref_slice %arg6[%c7_i32] : memref<8x!tpu.dma_semaphore, #tpu.memory_space<semaphore_mem>> -> memref<1x!tpu.dma_semaphore, #tpu.memory_space<semaphore_mem>>
    %48 = tpu.memref_squeeze %47 : memref<1x!tpu.dma_semaphore, #tpu.memory_space<semaphore_mem>> -> memref<!tpu.dma_semaphore, #tpu.memory_space<semaphore_mem>>
    tpu.wait_dma2 semaphore(%48 : memref<!tpu.dma_semaphore, #tpu.memory_space<semaphore_mem>>) src(%44 : memref<32xf32, #tpu.memory_space<any>>) dst(%46 : memref<32xf32, #tpu.memory_space<vmem>>)
    %c0 = arith.constant 0 : index
    %c0_27 = arith.constant 0 : index
    %49 = vector.load %arg5[%c0, %c0_27] : memref<16x32xf32, #tpu.memory_space<vmem>>, vector<16x32xf32>
    %c0_28 = arith.constant 0 : index
    %c0_29 = arith.constant 0 : index
    %50 = vector.load %arg2[%c0_28, %c0_29] : memref<16x32xf32, #tpu.memory_space<vmem>>, vector<16x32xf32>
    %51 = arith.addf %49, %50 : vector<16x32xf32>
    %c0_30 = arith.constant 0 : index
    %c0_31 = arith.constant 0 : index
    %c0_32 = arith.constant 0 : index
    %52 = vector.load %arg4[%c0_30, %c0_31, %c0_32] : memref<1x16x32xf32, #tpu.memory_space<vmem>>, vector<1x16x32xf32>
    %53 = vector.shape_cast %52 : vector<1x16x32xf32> to vector<16x32xf32>
    %54 = vector.shape_cast %51 : vector<16x32xf32> to vector<1x16x32xf32>
    tpu.vector_store %arg4[%c0_30, %c0_31, %c0_32], %54 {strides = array<i32>} : memref<1x16x32xf32, #tpu.memory_space<vmem>>, vector<1x16x32xf32>,
    return
  }
  func.func @transform_0(%arg0: i32, %arg1: memref<2x16xi32, #tpu.memory_space<smem>>) -> (i32, i32) {
    %c0_i32 = arith.constant 0 : i32
    %c0_i32_0 = arith.constant 0 : i32
    %c0_i32_1 = arith.constant 0 : i32
    return %c0_i32, %c0_i32_0 : i32, i32
  }
  func.func @transform_2(%arg0: i32, %arg1: memref<2x16xi32, #tpu.memory_space<smem>>) -> (i32, i32, i32) {
    %c0_i32 = arith.constant 0 : i32
    %c0_i32_0 = arith.constant 0 : i32
    %c0_i32_1 = arith.constant 0 : i32
    return %arg0, %c0_i32, %c0_i32_0 : i32, i32, i32
  }
}

</mosaic_0001>

<bundles_post_ra>
// kernel: tpu_custom_call.1
= control target key start
LH: loop header
LB: loop body
LE: loop exit
PB: predicated region body
PF: predicated region fallthrough
CT: control target
= control target key end

     0   :  { %s581_s12 = smov [#allocation5]   ;;  %s766_s0 = inlined_call_operand.hbm [shape: s32[2,16], index: 0, kind: input, shape index: {}]   ;;  %s767_s1 = inlined_call_operand.hbm [shape: f32[16,32], index: 1, kind: input, shape index: {}]   ;;  %s768_s2 = inlined_call_operand.hbm [shape: f32[27,32], index: 2, kind: input, shape index: {}]   ;;  %s769_s3 = inlined_call_operand.hbm [shape: f32[2,16,32], index: 3, kind: output, shape index: {}]  }
   0x1   :  { %771 = sst [smem:[#allocation27_spill]] %s767_s1 }
   0x2   :  { %9 = dma.hbm_to_smem %s766_s0, 32, %s581_s12, [#allocation4] }
   0x3   :  { %531 = dma.done.wait [#allocation4], 32 }
   0x4   :  { %532 = vsyncadd [#allocation4], 4294967264 }
   0x5   :  { %11 = sfence }
   0x6   :  { %12 = vsyncpa [#allocation7], 0 }
   0x7   :  { %13 = vsyncpa [#allocation8], 0 }
   0x8   :  { %15 = vsyncpa [#allocation8 + $0x1], 0  ;;  %s612_s15 = smov 0   ;;  %s614_s16 = smov 0  }
   0x9   :  { %s616_s17 = smov 0   ;;  %s618_s18 = smov 0  }
   0xa LB: > { %s633_s0 = sadd.s32 4294967295, %s575_s18   ;;  %s337_s19 = sadd.s32 4294967294, %s575_s18   ;;  %s575_s18 = sphi %s618_s18, %s783_s18   ;;  %s571_s17 = sphi %s616_s17, %s782_s17   ;;  %s567_s16 = sphi %s614_s16, %s781_s16   ;;  %s563_s15 = sphi %s612_s15, %s780_s15  }
   0xb   : > { %s637_s20 = sadd.s32 1, %s575_s18   ;;  %s49_s21 = sadd.s32 1, %s571_s17 }
   0xc   : > { %s46_s22 = ssub.s32 %s575_s18, %s637_s20  ;;  %p59_p0 = scmp.ne.s32.totalorder %s571_s17, %s567_s16 }
   0xd   : > { %p47_p1 = scmp.eq.s32.totalorder %s46_s22, 0  ;;  %p60_p2 = scmp.eq.s32.totalorder %s633_s0, 1 }
   0xe   : > { %p65_p3 = scmp.ne.s32.totalorder %s567_s16, %s563_s15  ;;  %p66_p4 = scmp.eq.s32.totalorder %s337_s19, 1 }
   0xf   : > { %s648_s23 = scalar_select %p47_p1, %s571_s17, %s49_s21  }
  0x10   : > { %p650_p5 = por %p60_p2, %p59_p0  ;;  %p654_p6 = por %p66_p4, %p65_p3 }
  0x11   : > { %772 = sst [smem:[#allocation26_spill]] %s648_s23  ;;  %p338_p7 = scmp.ge.s32.totalorder %s575_s18, 1 }
  0x12   : > { %s774_s25 = scalar_select %p654_p6, 1, 0 }
  0x13   : > { %p73_p8 = scmp.lt.s32.totalorder %s575_s18, 3  ;;  %p379_p9 = scmp.eq.s32.totalorder %s633_s0, 0 }
  0x14   : > { %s582_s27 = smov [#allocation6]  }
  0x15   : > { %p661_p10 = pnand %p338_p7, %p73_p8  ;;  %s85_s28 = sshll.u32 %s582_s27, 4  ;;  %s86_s28 = int_to_ptr.vmem [resolvable:$true] %s85_s28 }
  0x16   : > { %s448_s29 = scalar_lea.vmem %s86_s28, 256  ;;  %p456_p3 = scmp.lt.s32.totalorder %s86_s28, %s86_s28 }
  0x17   : > { %p371_p11 = pneg %p661_p10  ;;  %p449_p0 = scmp.ne.s32.totalorder %s86_s28, %s448_s29 }
  0x18   : > { %p457_p4 = scmp.lt.s32.totalorder %s448_s29, %s448_s29 }
  0x19   : > { %p372_p12 = pnand %p379_p9, %p371_p11 }
  0x1a   : > { %p458_p6 = por %p457_p4, %p456_p3 }
  0x1b   : > { %p439_p13 = pneg %p372_p12 }
  0x1d   : > { %p451_p1 = pnand %p449_p0, %p439_p13 }
  0x1f   : > { %p452_p2 = pneg %p451_p1 }
  0x21   : > { %p459_p7 = pnand %p458_p6, %p452_p2 }
  0x23   : > { %462 = shalt.err (!%p459_p7)
}
  0x24   : > { %s583_s30 = smov 128   ;;  %s584_s4 = smov 8  }
  0x25   : > { %s776_s1 = sld [smem:[#allocation27_spill]] }
  0x27   : > { %101 = sbr.rel (%p661_p10) target bundleno = 137 (0x89), region = 24 }
  0x2b   : > { %374 = dma.hbm_to_vmem [thread:$0]  (!%p372_p12), %s776_s1, 256, %s86_s28, [#allocation7], %s583_s30, %s583_s30, %s584_s4  }
  0x2c   : > { %534 = dma.done.wait (%p379_p9), [#allocation7], 256  }
  0x2d   : > { %536 = vsyncadd (%p379_p9), [#allocation7], 4294967040  ;;  %s770_s7 = sand.u32 1, %s567_s16   ;;  %s683_s10 = smov 0  }
  0x2e   : > { %s342_s8 = sshll.u32 %s770_s7, 4 }
  0x2f   : > { %s681_s9 = scalar_lea.vmem [#allocation9], %s342_s8 }
  0x30 LB: >> { %p122_p6 = scmp.lt.s32.totalorder %s579_s10, 0  ;;  %s123_s11 = ssub.s32 0, %s579_s10  ;;  %s579_s10 = sphi %s683_s10, %s121_s10  }
  0x31   : >> { %s343_s12 = smin.u32 %s579_s10, %s123_s11  ;;  %p381_p8 = scmp.ge.s32.totalorder %s579_s10, 8 }
  0x32   : >> { %s125_s13 = sand.u32 7, %s343_s12  }
  0x33   : >> { %s126_s14 = ssub.s32 0, %s125_s13 }
  0x34   : >> { %s785_s14 = smov (!%p122_p6, %s126_s14), %s125_s13 }
  0x35   : >> { %p345_p9 = scmp.lt.s32.totalorder %s785_s14, 0  ;;  %s132_s19 = sadd.s32 8, %s785_s14 }
  0x37   : >> { %s787_s19 = smov (!%p345_p9, %s132_s19), %s785_s14 }
  0x38   : >> { %s692_s21 = scalar_lea.sflag [#allocation3], %s787_s19 }
  0x39   : >> { %538 = dma.done.wait (%p381_p8), %s692_s21, 16 }
  0x3a   : >> { %540 = vsyncadd (%p381_p8), %s692_s21, 4294967280  ;;  %s141_s22 = sshra.s32 %s579_s10, 7  ;;  %s146_s26 = sand.u32 127, %s579_s10 }
  0x3b   : >> { %s143_s27 = sadd.s32 %s633_s0, %s141_s22  ;;  %s151_s4 = scalar_lea.vmem [#allocation2], %s579_s10 }
  0x3c   : >> { %s347_s28 = sshll.u32 %s143_s27, 7  ;;  %s160_s5 = sshll.u32 %s151_s4, 4  ;;  %s161_s5 = int_to_ptr.vmem [resolvable:$true] %s160_s5 }
  0x3d   : >> { %s147_s29 = sadd.s32 %s347_s28, %s146_s26  ;;  %s465_s7 = scalar_lea.hbm %s768_s2, 512 }
  0x3e   : >> { %s148_s30 = sld [smem:[#allocation5 + %s147_s29]] }
  0x44   : >> { %s348_s6 = sshll.u32 %s148_s30, 4 }
  0x45   : >> { %s150_s12 = scalar_lea.hbm %s768_s2, %s348_s6 }
  0x46   : >> { %s463_s13 = scalar_lea.hbm %s150_s12, 16  ;;  %p466_p11 = scmp.lt.s32.totalorder %s150_s12, %s768_s2 }
  0x47   : >> { %p464_p10 = scmp.ne.s32.totalorder %s150_s12, %s463_s13  ;;  %p467_p12 = scmp.lt.s32.totalorder %s465_s7, %s463_s13 }
  0x49   : >> { %p468_p13 = por %p467_p12, %p466_p11 }
  0x4b   : >> { %p469_p0 = pnand %p468_p13, %p464_p10 }
  0x4d   : >> { %472 = shalt.err (!%p469_p0)  }
  0x4e   : >> { %s473_s22 = scalar_lea.vmem %s161_s5, 16  ;;  %s585_s26 = smov [#allocation2]  }
  0x4f   : >> { %p474_p1 = scmp.ne.s32.totalorder %s161_s5, %s473_s22  ;;  %s475_s27 = sshll.u32 %s585_s26, 4  ;;  %s476_s27 = int_to_ptr.vmem [resolvable:$false] %s475_s27 }
  0x50   : >> { %s477_s28 = scalar_lea.vmem %s476_s27, 256  ;;  %p478_p2 = scmp.lt.s32.totalorder %s161_s5, %s476_s27 }
  0x51   : >> { %p479_p3 = scmp.lt.s32.totalorder %s477_s28, %s473_s22 }
  0x53   : >> { %p480_p4 = por %p479_p3, %p478_p2 }
  0x55   : >> { %p481_p7 = pnand %p480_p4, %p474_p1 }
  0x57   : >> { %484 = shalt.err (!%p481_p7)  }
  0x58   : >> { %163 = dma.hbm_to_vmem [thread:$0]  %s150_s12, 16, %s161_s5, %s692_s21 }
  0x59   : >> { %s121_s10 = sadd.s32 1, %s579_s10  }
  0x5a   : >> { %p118_p6 = scmp.ge.s32.totalorder %s121_s10, 16  }
  0x5c   : > { %120 = sbr.rel (!%p118_p6) target bundleno = 48 (0x30), region = 94 }
  0x61   : > { %541 = dma.done.wait [#allocation3], 16 }
  0x62   : > { %542 = vsyncadd [#allocation3], 4294967280 }
  0x63   : > { %543 = dma.done.wait [#allocation3 + $0x1], 16 }
  0x64   : > { %544 = vsyncadd [#allocation3 + $0x1], 4294967280 }
  0x65   : > { %545 = dma.done.wait [#allocation3 + $0x2], 16 }
  0x66   : > { %546 = vsyncadd [#allocation3 + $0x2], 4294967280 }
  0x67   : > { %547 = dma.done.wait [#allocation3 + $0x3], 16 }
  0x68   : > { %548 = vsyncadd [#allocation3 + $0x3], 4294967280 }
  0x69   : > { %549 = dma.done.wait [#allocation3 + $0x4], 16 }
  0x6a   : > { %550 = vsyncadd [#allocation3 + $0x4], 4294967280 }
  0x6b   : > { %551 = dma.done.wait [#allocation3 + $0x5], 16 }
  0x6c   : > { %552 = vsyncadd [#allocation3 + $0x5], 4294967280 }
  0x6d   : > { %553 = dma.done.wait [#allocation3 + $0x6], 16 }
  0x6e   : > { %554 = vsyncadd [#allocation3 + $0x6], 4294967280 }
  0x6f   : > { %555 = dma.done.wait [#allocation3 + $0x7], 16 }
  0x70   : > { %556 = vsyncadd [#allocation3 + $0x7], 4294967280  ;;  %s362_s1 = sshll.u32 %s633_s0, 8  ;;  %s210_s23 = sshll.u32 %s681_s9, 4  ;;  %v187_v0 = vld [vmem:[#allocation2] sm:$0xff]  ;;  %v189_v1 = vld [vmem:[#allocation6] sm:$0xff]  ;;  %s720_s23 = int_to_ptr.vmem [resolvable:$true] %s210_s23 }
  0x71   : > { %vm193_vm0 = vcmask 261120   ;;  %v188_v2 = vld [vmem:[#allocation2 + $0x8] sm:$0xff]  ;;  %v191_v3 = vadd.f32 %v189_v1, %v187_v0  ;;  %v190_v4 = vld [vmem:[#allocation6 + $0x8] sm:$0xff]  ;;  %s718_s21 = scalar_lea.hbm %s769_s3, %s362_s1  ;;  %s777_s0 = sand.u32 1, %s567_s16  }
  0x72   : > { %v192_v5 = vadd.f32 %v190_v4, %v188_v2  ;;  %s726_s29 = scalar_lea.sflag [#allocation8], %s777_s0  ;;  %s485_s30 = scalar_lea.vmem %s720_s23, 256 }
  0x73   : > { %194 = vst.msk [vmem:[%s681_s9] sm:$0xff] %vm193_vm0, %v191_v3  ;;  %p486_p8 = scmp.ne.s32.totalorder %s720_s23, %s485_s30  ;;  %s586_s4 = smov [#allocation9]  }
  0x74   : > { %195 = vst.msk [vmem:[%s681_s9 + $0x8] sm:$0xff] %vm193_vm0, %v192_v5  ;;  %s489_s5 = sshll.u32 %s586_s4, 4  ;;  %s490_s5 = int_to_ptr.vmem [resolvable:$false] %s489_s5 }
  0x75   : > { %p487_p9 = pnand %p486_p8, %p650_p5  ;;  %s491_s6 = scalar_lea.vmem %s490_s5, 512 }
  0x76   : > { %p492_p11 = scmp.lt.s32.totalorder %s720_s23, %s490_s5  ;;  %p493_p12 = scmp.lt.s32.totalorder %s491_s6, %s485_s30 }
  0x77   : > { %p488_p10 = pneg %p487_p9 }
  0x78   : > { %p494_p13 = por %p493_p12, %p492_p11 }
  0x7a   : > { %p495_p0 = pnand %p494_p13, %p488_p10 }
  0x7c   : > { %498 = shalt.err (!%p495_p0)
}
  0x7d   : > { %s499_s9 = scalar_lea.hbm %s718_s21, 256  ;;  %s503_s12 = scalar_lea.hbm %s769_s3, 512 }
  0x7e   : > { %p500_p1 = scmp.ne.s32.totalorder %s718_s21, %s499_s9  ;;  %p504_p4 = scmp.lt.s32.totalorder %s718_s21, %s769_s3 }
  0x7f   : > { %p505_p7 = scmp.lt.s32.totalorder %s503_s12, %s499_s9 }
  0x80   : > { %p501_p2 = pnand %p500_p1, %p650_p5 }
  0x81   : > { %p506_p6 = por %p505_p7, %p504_p4 }
  0x82   : > { %p502_p3 = pneg %p501_p2 }
  0x84   : > { %p507_p8 = pnand %p506_p6, %p502_p3 }
  0x86   : > { %510 = shalt.err (!%p507_p8)
}
  0x87   : > { %s587_s19 = smov 128   ;;  %s588_s22 = smov 8  }
  0x88   : > { %369 = dma.vmem_to_hbm [thread:$0]  (%p650_p5), %s720_s23, 256, %s718_s21, %s726_s29, %s587_s19, %s587_s19, %s588_s22  }
  0x89 PF: > { %p382_p9 = scmp.ge.s32.totalorder %s575_s18, 2  ;;  %s225_s26 = sand.u32 1, %s563_s15  }
  0x8a   : > { %p778_p10 = scmp.ne.s32.totalorder %s774_s25, 0  ;;  %s226_s27 = scalar_lea.sflag [#allocation8], %s225_s26 }
  0x8c   : > { %p376_p11 = pnand %p382_p9, %p778_p10 }
  0x8e   : > { %p377_p12 = pneg %p376_p11 }
  0x90   : > { %558 = dma.done.wait (%p377_p12), %s226_s27, 256  }
  0x91   : > { %560 = vsyncadd (%p377_p12), %s226_s27, 4294967040  ;;  %s779_s28 = sld [smem:[#allocation26_spill]]  ;;  %p18_p13 = scmp.ge.s32.totalorder %s637_s20, 4  }
  0x92   : > { %s780_s15 = smov %s567_s16  ;;  %s781_s16 = smov %s571_s17 }
  0x93   : > { %s783_s18 = smov %s637_s20  ;;  %20 = sbr.rel (!%p18_p13) target bundleno = 10 (0xa), region = 105 }
  0x97   : > { %s782_s17 = smov %s779_s28 }
  0x98   :  { %231 = vsyncpa [#allocation7], 1 }
  0x99   :  { %233 = vsyncpa [#allocation7 + $0x1], 1 }
  0x9a   :  { %234 = vsyncpa [#allocation8], 1 }
  0x9b   :  { %236 = vsyncpa [#allocation8 + $0x1], 1 }
  0x9c   :  { %237 = vsyncmov [#allocation3] }
  0x9f   :  { %s238_s18 = vpop.sfrf %237 }
  0xa0   :  { %p354_p5 = scmp.ne.s32.totalorder %s238_s18, 0 }
  0xa2   :  { %242 = shalt.err (%p354_p5)  }
  0xa3   :  { %244 = vsyncmov [#allocation3 + $0x1] }
  0xa6   :  { %s245_s24 = vpop.sfrf %244 }
  0xa7   :  { %p355_p0 = scmp.ne.s32.totalorder %s245_s24, 0 }
  0xa9   :  { %249 = shalt.err (%p355_p0)  }
  0xaa   :  { %251 = vsyncmov [#allocation3 + $0x2] }
  0xad   :  { %s252_s25 = vpop.sfrf %251 }
  0xae   :  { %p356_p1 = scmp.ne.s32.totalorder %s252_s25, 0 }
  0xb0   :  { %256 = shalt.err (%p356_p1)  }
  0xb1   :  { %258 = vsyncmov [#allocation3 + $0x3] }
  0xb4   :  { %s259_s1 = vpop.sfrf %258 }
  0xb5   :  { %p357_p2 = scmp.ne.s32.totalorder %s259_s1, 0 }
  0xb7   :  { %263 = shalt.err (%p357_p2)  }
  0xb8   :  { %265 = vsyncmov [#allocation3 + $0x4] }
  0xbb   :  { %s266_s2 = vpop.sfrf %265 }
  0xbc   :  { %p358_p3 = scmp.ne.s32.totalorder %s266_s2, 0 }
  0xbe   :  { %270 = shalt.err (%p358_p3)  }
  0xbf   :  { %272 = vsyncmov [#allocation3 + $0x5] }
  0xc2   :  { %s273_s3 = vpop.sfrf %272 }
  0xc3   :  { %p359_p4 = scmp.ne.s32.totalorder %s273_s3, 0 }
  0xc5   :  { %277 = shalt.err (%p359_p4)  }
  0xc6   :  { %279 = vsyncmov [#allocation3 + $0x6] }
  0xc9   :  { %s280_s15 = vpop.sfrf %279 }
  0xca   :  { %p360_p7 = scmp.ne.s32.totalorder %s280_s15, 0 }
  0xcc   :  { %284 = shalt.err (%p360_p7)  }
  0xcd   :  { %286 = vsyncmov [#allocation3 + $0x7] }
  0xd0   :  { %s287_s16 = vpop.sfrf %286 }
  0xd1   :  { %p361_p6 = scmp.ne.s32.totalorder %s287_s16, 0 }
  0xd3   :  { %291 = shalt.err (%p361_p6)  }

</bundles_post_ra>
